<compile_context>
chip_gen: v5e
topology: v5e:2x2
jax: 0.10.0
libtpu: 0.0.40
codegen_flags: <defaults>
</compile_context>

<pallas_src>
import functools

import jax
import jax.numpy as jnp
from jax import lax
from jax.experimental import pallas as pl
from jax.experimental.pallas import tpu as pltpu

EPS = 1e-5

_VMEM_LIMIT_BYTES = 48 * 1024 * 1024   # > v5e 16 MiB default scoped, < v7x 64 MiB physical
_PASS1_BUDGET = 8 * 1024 * 1024        # pass 1 streams only the input (2 buffers)
_PASS2_BUDGET = 6 * 1024 * 1024        # pass 2 holds ~4x block (in+out, double-buffered)
_FUSED_MAX_F32_BYTES = 4 * 1024 * 1024 # conservative: fused temps fit every generation


def _round_up(v, m):
    return (v + m - 1) // m * m


def _choose_m_tile(hw, c, itemsize, budget_bytes):
    """Largest 128-multiple HW-tile whose (C, tm) block fits the byte budget
    (at least 128 lanes; never more than HW rounded up to 128)."""
    max_tm = max(128, (budget_bytes // max(1, c * itemsize)) // 128 * 128)
    return min(max_tm, _round_up(hw, 128))


# ----------------------------------------------------------------------------
# Kernels
# ----------------------------------------------------------------------------
def _fused_kernel(x_ref, gamma_ref, beta_ref, o_ref, *, inv_count):
    """Whole activation resident in VMEM: stats + normalize in one pass."""
    x = x_ref[...].astype(jnp.float32)                          # (N, C, HW)
    s = jnp.sum(jnp.sum(x, axis=2, keepdims=True), axis=0, keepdims=True)
    sq = jnp.sum(jnp.sum(x * x, axis=2, keepdims=True), axis=0, keepdims=True)
    mean = s * inv_count                                        # (1, C, 1)
    var = jnp.maximum(sq * inv_count - mean * mean, 0.0)
    scale = gamma_ref[...] * lax.rsqrt(var + EPS)               # (1, C, 1)
    bias = beta_ref[...] - mean * scale
    o_ref[...] = (x * scale + bias).astype(o_ref.dtype)


def _stats_kernel(x_ref, part_ref, sum_ref, sq_ref, *, hw, tm):
    """Pass 1: per-sample partial sum / sumsq over the HW tiles.

    x_ref:    (C, tm) tile (N squeezed)
    part_ref: (C, 2)  per-sample output (col 0 = sum, col 1 = sumsq)
    sum_ref, sq_ref: (C, 1) f32 VMEM scratch accumulators
    """
    m = pl.program_id(1)

    @pl.when(m == 0)
    def _init():
        sum_ref[...] = jnp.zeros_like(sum_ref)
        sq_ref[...] = jnp.zeros_like(sq_ref)

    x = x_ref[...].astype(jnp.float32)                          # single read
    if hw % tm != 0:
        # Edge block extends past HW: zero the padded lanes before reducing.
        lane = lax.broadcasted_iota(jnp.int32, x.shape, dimension=1)
        x = jnp.where(m * tm + lane < hw, x, 0.0)
    sum_ref[...] += jnp.sum(x, axis=1, keepdims=True)           # (C, 1)
    sq_ref[...] += jnp.sum(x * x, axis=1, keepdims=True)        # (C, 1)

    @pl.when(m == pl.num_programs(1) - 1)
    def _finalize():
        part_ref[:, 0:1] = sum_ref[...]
        part_ref[:, 1:2] = sq_ref[...]


def _norm_kernel(x_ref, scale_ref, bias_ref, o_ref):
    """Pass 2: y = x * scale + bias (single FMA per element)."""
    x = x_ref[...].astype(jnp.float32)
    o_ref[...] = (x * scale_ref[...] + bias_ref[...]).astype(o_ref.dtype)


# ----------------------------------------------------------------------------
# Wrappers
# ----------------------------------------------------------------------------
def _batchnorm2d_fused(x, gamma, beta):
    """Single-pass BN for activations that fit in VMEM. x: (N, C, HW)."""
    N, C, HW = x.shape
    inv_count = 1.0 / float(N * HW)
    g = gamma.reshape(1, C, 1).astype(jnp.float32)
    b = beta.reshape(1, C, 1).astype(jnp.float32)
    return pl.pallas_call(
        functools.partial(_fused_kernel, inv_count=inv_count),
        out_shape=jax.ShapeDtypeStruct((N, C, HW), x.dtype),
        grid_spec=pltpu.PrefetchScalarGridSpec(
            num_scalar_prefetch=0,
            grid=(1,),
            in_specs=[pl.BlockSpec((N, C, HW), lambda i: (0, 0, 0)),
                      pl.BlockSpec((1, C, 1), lambda i: (0, 0, 0)),
                      pl.BlockSpec((1, C, 1), lambda i: (0, 0, 0))],
            out_specs=pl.BlockSpec((N, C, HW), lambda i: (0, 0, 0)),
        ),
        compiler_params=pltpu.CompilerParams(
            dimension_semantics=("arbitrary",),
            vmem_limit_bytes=_VMEM_LIMIT_BYTES),
    )(x, g, b)


def _batchnorm2d_tiled(x, gamma, beta, *,
                       budget1=_PASS1_BUDGET, budget2=_PASS2_BUDGET):
    """Two-pass tiled BN. x: (N, C, HW)."""
    N, C, HW = x.shape
    itemsize = jnp.dtype(x.dtype).itemsize
    inv_count = 1.0 / float(N * HW)

    # ---- Pass 1: per-sample partial (sum, sumsq) -> (N, C, 2) --------------
    tm1 = _choose_m_tile(HW, C, itemsize, budget1)
    num_m1 = pl.cdiv(HW, tm1)
    partials = pl.pallas_call(
        functools.partial(_stats_kernel, hw=HW, tm=tm1),
        out_shape=jax.ShapeDtypeStruct((N, C, 2), jnp.float32),
        grid_spec=pltpu.PrefetchScalarGridSpec(
            num_scalar_prefetch=0,
            grid=(N, num_m1),
            in_specs=[pl.BlockSpec((None, C, tm1), lambda n, m: (n, 0, m))],
            out_specs=pl.BlockSpec((None, C, 2), lambda n, m: (n, 0, 0)),
            scratch_shapes=[pltpu.VMEM((C, 1), jnp.float32),
                            pltpu.VMEM((C, 1), jnp.float32)],
        ),
        compiler_params=pltpu.CompilerParams(
            dimension_semantics=("parallel", "arbitrary"),
            vmem_limit_bytes=_VMEM_LIMIT_BYTES),
    )(x)

    # ---- Fold batch stats into per-channel scale / bias (tiny, plain XLA) ---
    sums = jnp.sum(partials[:, :, 0], axis=0)                   # (C,)
    sqs = jnp.sum(partials[:, :, 1], axis=0)                    # (C,)
    mean = sums * inv_count
    # Biased variance via E[x^2] - mean^2 in f32 (clamped at 0).
    var = jnp.maximum(sqs * inv_count - mean * mean, 0.0)
    scale_v = gamma.astype(jnp.float32) * lax.rsqrt(var + EPS)
    bias_v = beta.astype(jnp.float32) - mean * scale_v
    scale = scale_v.reshape(C, 1)
    bias = bias_v.reshape(C, 1)

    # ---- Pass 2: y = x * scale + bias ---------------------------------------
    tm2 = _choose_m_tile(HW, C, itemsize, budget2)
    num_m2 = pl.cdiv(HW, tm2)
    return pl.pallas_call(
        _norm_kernel,
        out_shape=jax.ShapeDtypeStruct((N, C, HW), x.dtype),
        grid_spec=pltpu.PrefetchScalarGridSpec(
            num_scalar_prefetch=0,
            grid=(N, num_m2),
            in_specs=[pl.BlockSpec((None, C, tm2), lambda n, m: (n, 0, m)),
                      pl.BlockSpec((C, 1), lambda n, m: (0, 0)),
                      pl.BlockSpec((C, 1), lambda n, m: (0, 0))],
            out_specs=pl.BlockSpec((None, C, tm2), lambda n, m: (n, 0, m)),
        ),
        compiler_params=pltpu.CompilerParams(
            dimension_semantics=("parallel", "parallel"),
            vmem_limit_bytes=_VMEM_LIMIT_BYTES),
    )(x, scale, bias)


@jax.jit
def batchnorm2d_pallas(x_nchw, gamma, beta):
    """x_nchw: (N, C, H, W); gamma/beta: (C,). Returns (N, C, H, W)."""
    N, C, H, W = x_nchw.shape
    HW = H * W
    x = x_nchw.reshape(N, C, HW)          # free reshape, no transpose
    if N * C * HW * 4 <= _FUSED_MAX_F32_BYTES:
        out = _batchnorm2d_fused(x, gamma, beta)
    else:
        out = _batchnorm2d_tiled(x, gamma, beta)
    return out.reshape(N, C, H, W)


# ----------------------------------------------------------------------------
# Module mirror
# ----------------------------------------------------------------------------
class SwitchableBatchNorm2dPallas:
    """Mirror of the PyTorch module: builds every BN parameter set, but
    forward() only uses index = weight_bit - 2 == 0 (weight_bit == 2)."""

    def __init__(self, out_channels, oneBit_outchannel, groups=-1,
                 last_conv=False, key=None):
        self.last_conv = last_conv
        self.groups = groups
        base = out_channels // groups
        if last_conv:
            widths = [base * 1, base * 2, base * 2, base * 3, base * 3,
                      base * 4, base * 4, out_channels]
        else:
            widths = [base * 1, base * 1 + oneBit_outchannel, base * 2,
                      base * 2 + oneBit_outchannel, base * 3,
                      base * 3 + oneBit_outchannel, base * 4]
        if key is None:
            key = jax.random.PRNGKey(0)
        # Deterministic parameter init (gamma ~ U[0.5, 1.5), beta ~ N(0, 0.1)).
        self.params = []
        for c in widths:
            key, k1, k2 = jax.random.split(key, 3)
            gamma = jax.random.uniform(k1, (c,), jnp.float32, 0.5, 1.5)
            beta = 0.1 * jax.random.normal(k2, (c,), jnp.float32)
            self.params.append((gamma, beta))
        self.weight_bit = 2
        self.act_bit = 2

    def __call__(self, x):
        index = self.weight_bit - 2  # == 0
        gamma, beta = self.params[index]
        assert x.shape[1] == gamma.shape[0], "channel mismatch for selected BN"
        return batchnorm2d_pallas(x, gamma, beta)


def _reference_bn(x, gamma, beta):
    # Pure-JAX reference of training-mode BatchNorm2d (biased var, eps=1e-5).
    mean = jnp.mean(x, axis=(0, 2, 3), keepdims=True)
    var = jnp.mean((x - mean) ** 2, axis=(0, 2, 3), keepdims=True)
    xh = (x - mean) / jnp.sqrt(var + EPS)
    return xh * gamma.reshape(1, -1, 1, 1) + beta.reshape(1, -1, 1, 1)


if __name__ == "__main__":
    # --- Module-level test (fast fused path) ---------------------------------
    key = jax.random.PRNGKey(0)
    # out_channels=16, groups=4 -> bn[0] has 16 // 4 * 1 = 4 channels.
    mod = SwitchableBatchNorm2dPallas(out_channels=16, oneBit_outchannel=2,
                                      groups=4, last_conv=False,
                                      key=jax.random.PRNGKey(42))
    x = jax.random.normal(key, (2, 4, 16, 16), jnp.float32)  # NCHW
    out = jax.block_until_ready(mod(x))
    gamma, beta = mod.params[0]
    ref = _reference_bn(x, gamma, beta)
    assert out.shape == x.shape
    assert jnp.max(jnp.abs(out - ref)) < 1e-4, "fused path mismatch vs reference"

    # --- Tiled path: non-128-divisible HW, tiny budget -> multi-block + mask --
    x2 = jax.random.normal(jax.random.PRNGKey(1), (2, 8, 10, 20), jnp.float32)
    g2 = jnp.linspace(0.5, 1.5, 8, dtype=jnp.float32)
    b2 = jnp.linspace(-0.2, 0.2, 8, dtype=jnp.float32)
    out2 = jax.block_until_ready(
        _batchnorm2d_tiled(x2.reshape(2, 8, 200), g2, b2,
                           budget1=8 * 128 * 4, budget2=8 * 128 * 4))
    ref2 = _reference_bn(x2, g2, b2)
    assert jnp.max(jnp.abs(out2.reshape(x2.shape) - ref2)) < 1e-4, \
        "tiled path (multi-block, masked edge) mismatch vs reference"

    # --- Tiled path: HW=49 (7x7) -> single 128-lane padded block -------------
    x3 = jax.random.normal(jax.random.PRNGKey(2), (2, 8, 7, 7), jnp.float32)
    out3 = jax.block_until_ready(_batchnorm2d_tiled(x3.reshape(2, 8, 49), g2, b2))
    ref3 = _reference_bn(x3, g2, b2)
    assert jnp.max(jnp.abs(out3.reshape(x3.shape) - ref3)) < 1e-4, \
        "tiled path (padded single block) mismatch vs reference"

    print("KERNEL_OK")
</pallas_src>

<mosaic_0001>
module attributes {stable_mosaic.version = 11 : i64} {
  func.func @_fused_kernel(%arg0: i32, %arg1: memref<2x4x256xf32, #tpu.memory_space<vmem>>, %arg2: memref<1x4x1xf32, #tpu.memory_space<vmem>>, %arg3: memref<1x4x1xf32, #tpu.memory_space<vmem>>, %arg4: memref<2x4x256xf32, #tpu.memory_space<vmem>>) attributes {dimension_semantics = [#tpu.dimension_semantics<arbitrary>], iteration_bounds = array<i64: 1>, scalar_prefetch = 0 : i64, scratch_operands = 0 : i64, tpu.core_type = #tpu.core_type<tc>, window_params = [{pipeline_mode = #tpu.pipeline_mode<synchronous>, transform_indices = @transform_0, window_bounds = array<i64: 2, 4, 256>}, {pipeline_mode = #tpu.pipeline_mode<synchronous>, transform_indices = @transform_1, window_bounds = array<i64: 1, 4, 1>}, {pipeline_mode = #tpu.pipeline_mode<synchronous>, transform_indices = @transform_2, window_bounds = array<i64: 1, 4, 1>}, {pipeline_mode = #tpu.pipeline_mode<synchronous>, transform_indices = @transform_3, window_bounds = array<i64: 2, 4, 256>}]} {
    %c0 = arith.constant 0 : index
    %c0_0 = arith.constant 0 : index
    %c0_1 = arith.constant 0 : index
    %0 = vector.load %arg1[%c0, %c0_0, %c0_1] : memref<2x4x256xf32, #tpu.memory_space<vmem>>, vector<2x4x256xf32>
    %cst = arith.constant dense<0.000000e+00> : vector<2x4xf32>
    %1 = vector.multi_reduction <add>, %0, %cst [2] : vector<2x4x256xf32> to vector<2x4xf32>
    %2 = vector.shape_cast %1 : vector<2x4xf32> to vector<2x4x1xf32>
    %cst_2 = arith.constant dense<0.000000e+00> : vector<4x1xf32>
    %3 = vector.multi_reduction <add>, %2, %cst_2 [0] : vector<2x4x1xf32> to vector<4x1xf32>
    %4 = vector.shape_cast %3 : vector<4x1xf32> to vector<1x4x1xf32>
    %5 = arith.mulf %0, %0 : vector<2x4x256xf32>
    %cst_3 = arith.constant dense<0.000000e+00> : vector<2x4xf32>
    %6 = vector.multi_reduction <add>, %5, %cst_3 [2] : vector<2x4x256xf32> to vector<2x4xf32>
    %7 = vector.shape_cast %6 : vector<2x4xf32> to vector<2x4x1xf32>
    %cst_4 = arith.constant dense<0.000000e+00> : vector<4x1xf32>
    %8 = vector.multi_reduction <add>, %7, %cst_4 [0] : vector<2x4x1xf32> to vector<4x1xf32>
    %9 = vector.shape_cast %8 : vector<4x1xf32> to vector<1x4x1xf32>
    %cst_5 = arith.constant 0.001953125 : f32
    %10 = vector.broadcast %cst_5 : f32 to vector<1x4x1xf32>
    %11 = arith.mulf %4, %10 : vector<1x4x1xf32>
    %cst_6 = arith.constant 0.001953125 : f32
    %12 = vector.broadcast %cst_6 : f32 to vector<1x4x1xf32>
    %13 = arith.mulf %9, %12 : vector<1x4x1xf32>
    %14 = arith.mulf %11, %11 : vector<1x4x1xf32>
    %15 = arith.subf %13, %14 : vector<1x4x1xf32>
    %cst_7 = arith.constant 0.000000e+00 : f32
    %16 = vector.broadcast %cst_7 : f32 to vector<1x4x1xf32>
    %17 = arith.maximumf %15, %16 : vector<1x4x1xf32>
    %c0_8 = arith.constant 0 : index
    %c0_9 = arith.constant 0 : index
    %c0_10 = arith.constant 0 : index
    %18 = vector.load %arg2[%c0_8, %c0_9, %c0_10] : memref<1x4x1xf32, #tpu.memory_space<vmem>>, vector<1x4x1xf32>
    %cst_11 = arith.constant 9.99999974E-6 : f32
    %19 = vector.broadcast %cst_11 : f32 to vector<1x4x1xf32>
    %20 = arith.addf %17, %19 : vector<1x4x1xf32>
    %21 = math.rsqrt %20 : vector<1x4x1xf32>
    %22 = arith.mulf %18, %21 : vector<1x4x1xf32>
    %c0_12 = arith.constant 0 : index
    %c0_13 = arith.constant 0 : index
    %c0_14 = arith.constant 0 : index
    %23 = vector.load %arg3[%c0_12, %c0_13, %c0_14] : memref<1x4x1xf32, #tpu.memory_space<vmem>>, vector<1x4x1xf32>
    %24 = arith.mulf %11, %22 : vector<1x4x1xf32>
    %25 = arith.subf %23, %24 : vector<1x4x1xf32>
    %26 = vector.broadcast %22 : vector<1x4x1xf32> to vector<2x4x256xf32>
    %27 = arith.mulf %0, %26 : vector<2x4x256xf32>
    %28 = vector.broadcast %25 : vector<1x4x1xf32> to vector<2x4x256xf32>
    %29 = arith.addf %27, %28 : vector<2x4x256xf32>
    %c0_15 = arith.constant 0 : index
    %c0_16 = arith.constant 0 : index
    %c0_17 = arith.constant 0 : index
    %30 = vector.load %arg4[%c0_15, %c0_16, %c0_17] : memref<2x4x256xf32, #tpu.memory_space<vmem>>, vector<2x4x256xf32>
    tpu.vector_store %arg4[%c0_15, %c0_16, %c0_17], %29 {strides = array<i32>} : memref<2x4x256xf32, #tpu.memory_space<vmem>>, vector<2x4x256xf32>,
    return
  }
  func.func @transform_0(%arg0: i32) -> (i32, i32, i32) {
    %c0_i32 = arith.constant 0 : i32
    %c0_i32_0 = arith.constant 0 : i32
    %c0_i32_1 = arith.constant 0 : i32
    %c0_i32_2 = arith.constant 0 : i32
    return %c0_i32, %c0_i32_0, %c0_i32_1 : i32, i32, i32
  }
  func.func @transform_1(%arg0: i32) -> (i32, i32, i32) {
    %c0_i32 = arith.constant 0 : i32
    %c0_i32_0 = arith.constant 0 : i32
    %c0_i32_1 = arith.constant 0 : i32
    %c0_i32_2 = arith.constant 0 : i32
    return %c0_i32, %c0_i32_0, %c0_i32_1 : i32, i32, i32
  }
  func.func @transform_2(%arg0: i32) -> (i32, i32, i32) {
    %c0_i32 = arith.constant 0 : i32
    %c0_i32_0 = arith.constant 0 : i32
    %c0_i32_1 = arith.constant 0 : i32
    %c0_i32_2 = arith.constant 0 : i32
    return %c0_i32, %c0_i32_0, %c0_i32_1 : i32, i32, i32
  }
  func.func @transform_3(%arg0: i32) -> (i32, i32, i32) {
    %c0_i32 = arith.constant 0 : i32
    %c0_i32_0 = arith.constant 0 : i32
    %c0_i32_1 = arith.constant 0 : i32
    %c0_i32_2 = arith.constant 0 : i32
    return %c0_i32, %c0_i32_0, %c0_i32_1 : i32, i32, i32
  }
}

</mosaic_0001>

<bundles_post_ra>
// kernel: batchnorm2d_pallas.1
= control target key start
LH: loop header
LB: loop body
LE: loop exit
PB: predicated region body
PF: predicated region fallthrough
CT: control target
= control target key end

     0   :  { %vm29_vm0 = vcmask 1043456   ;;  %v126_v25 = vmov 0   ;;  %v127_v53 = vmov 839922192   ;;  %s190_s0 = inlined_call_operand.vmem [shape: f32[2,4,256], index: 0, kind: input, shape index: {}]   ;;  %s191_s1 = inlined_call_operand.vmem [shape: f32[1,4,1], index: 1, kind: input, shape index: {}]   ;;  %s192_s2 = inlined_call_operand.vmem [shape: f32[1,4,1], index: 2, kind: input, shape index: {}]   ;;  %s193_s3 = inlined_call_operand.vmem [shape: f32[2,4,256], index: 3, kind: output, shape index: {}]  }
   0x1   :  { %v151_v0 = vld [vmem:[%s190_s0] sm:$0xff]  ;;  %v156_v1 = vld [vmem:[%s190_s0 + $0x8] sm:$0xff]  ;;  %122 = vset.pattern.permute.xlu2 %v126_v25  ;;  %123 = vset.pattern.permute.xlu0 %v126_v25  ;;  %v97_v54 = vunpack.c.l.s4 %v127_v53 }
   0x2   :  { %18 = vst [vmem:[#allocation1] ss:$2 sm:$0xff] %v151_v0  ;;  %v43_v2 = vmul.f32 %v151_v0, %v151_v0  ;;  %v44_v3 = vmul.f32 %v156_v1, %v156_v1  ;;  %v76_v46 = vld [vmem:[%s191_s1] sm:$0xf] }
   0x3   :  { %22 = vst [vmem:[#allocation1 + $0x10] ss:$2 sm:$0xff] %v156_v1  ;;  %v89_v51 = vld [vmem:[%s192_s2] sm:$0xf]  ;;  %v98_v56 = vunpack.c.0.s8 %v97_v54 }
   0x9   :  { %v19_v4 = vld.sshfl [vmem:[#allocation1] sm:$0xff pattern:$0x75316420]  ;;  %v20_v5 = vld.sshfl [vmem:[#allocation1 + $0x8] sm:$0xff pattern:$0x75316420] }
   0xa   :  { %v30_v6 = vsel %vm29_vm0, %v19_v4, 0.0  ;;  %v31_v7 = vsel %vm29_vm0, %v20_v5, 0.0  ;;  %47 = vst [vmem:[#allocation1] ss:$2 sm:$0xff] %v43_v2 }
   0xb   :  { %v32_v8 = vadd.f32 %v31_v7, %v30_v6  ;;  %v23_v9 = vld.sshfl [vmem:[#allocation1 + $0x10] sm:$0xff pattern:$0x75316420]  ;;  %v24_v10 = vld.sshfl [vmem:[#allocation1 + $0x18] sm:$0xff pattern:$0x75316420] }
   0xc   :  { %51 = vst [vmem:[#allocation1 + $0x10] ss:$2 sm:$0xff] %v44_v3  ;;  %v35_v11 = vsel %vm29_vm0, %v23_v9, 0.0  ;;  %v36_v12 = vsel %vm29_vm0, %v24_v10, 0.0 }
   0xd   :  { %33 = vadd.xlane.f32.xlu0 %v32_v8  ;;  %v37_v15 = vadd.f32 %v36_v12, %v35_v11 }
  0x11   :  { %v48_v13 = vld.sshfl [vmem:[#allocation1] sm:$0xff pattern:$0x75316420]  ;;  %v49_v14 = vld.sshfl [vmem:[#allocation1 + $0x8] sm:$0xff pattern:$0x75316420] }
  0x12   :  { %v58_v16 = vsel %vm29_vm0, %v48_v13, 0.0  ;;  %v59_v17 = vsel %vm29_vm0, %v49_v14, 0.0 }
  0x13   :  { %v60_v18 = vadd.f32 %v59_v17, %v58_v16  ;;  %v52_v19 = vld.sshfl [vmem:[#allocation1 + $0x10] sm:$0xff pattern:$0x75316420]  ;;  %v53_v20 = vld.sshfl [vmem:[#allocation1 + $0x18] sm:$0xff pattern:$0x75316420] }
  0x14   :  { %v63_v21 = vsel %vm29_vm0, %v52_v19, 0.0  ;;  %v64_v22 = vsel %vm29_vm0, %v53_v20, 0.0 }
  0x15   :  { %61 = vadd.xlane.f32.xlu1 %v60_v18  ;;  %38 = vadd.xlane.f32.xlu0 %v37_v15  ;;  %v65_v23 = vadd.f32 %v64_v22, %v63_v21 }
  0x1d   :  { %66 = vadd.xlane.f32.xlu1 %v65_v23 }
  0x80   :  { %v34_v24 = vpop.xlane.xlu0 %33 }
  0x81   :  { %v40_v29 = vsel %vm29_vm0, %v34_v24, 0.0 }
  0x88   :  { %v62_v26 = vpop.xlane.xlu1 %61  ;;  %v39_v27 = vpop.xlane.xlu0 %38 }
  0x89   :  { %v41_v28 = vsel %vm29_vm0, %v39_v27, 0.0  ;;  %v68_v33 = vsel %vm29_vm0, %v62_v26, 0.0 }
  0x8a   :  { %v42_v30 = vadd.f32 %v41_v28, %v40_v29 }
  0x8c   :  { %v71_v31 = vmul.f32 0.001953125, %v42_v30 }
  0x8e   :  { %v73_v36 = vmul.f32 %v71_v31, %v71_v31 }
  0x90   :  { %v67_v32 = vpop.xlane.xlu1 %66 }
  0x91   :  { %v69_v34 = vsel %vm29_vm0, %v67_v32, 0.0 }
  0x92   :  { %v70_v35 = vadd.f32 %v69_v34, %v68_v33 }
  0x94   :  { %v72_v37 = vmul.f32 0.001953125, %v70_v35 }
  0x96   :  { %v74_v38 = vsub.f32 %v72_v37, %v73_v36 }
  0x98   :  { %v75_v39 = vmax.f32 %v74_v38, 0.0 }
  0x9a   :  { %v77_v40 = vadd.f32 1e-05, %v75_v39 }
  0x9c   :  { %124 = vrsqrt.f32 %v77_v40  ;;  %vm84_vm2 = vweird.f32 %v77_v40 }
  0xa2   :  { %v125_v41 = vpop.eup %124 }
  0xa3   :  { %v79_v42 = vmul.f32 %v125_v41, %v77_v40  ;;  %vm85_vm1 = vweird.f32 %v125_v41 }
  0xa4   :  { %vm86_vm3 = vmor %vm84_vm2, %vm85_vm1 }
  0xa5   :  { %v80_v43 = vmul.f32 %v125_v41, %v79_v42 }
  0xa7   :  { %v81_v44 = vmul.f32 0.5, %v80_v43 }
  0xa9   :  { %v82_v45 = vsub.f32 1.5, %v81_v44 }
  0xab   :  { %v83_v47 = vmul.f32 %v125_v41, %v82_v45 }
  0xad   :  { %v87_v48 = vsel %vm86_vm3, %v125_v41, %v83_v47 }
  0xae   :  { %v88_v49 = vmul.f32 %v87_v48, %v76_v46 }
  0xb0   :  { %94 = vperm.xlu2 %122, %v88_v49   ;;  %v90_v50 = vmul.f32 %v88_v49, %v71_v31 }
  0xb2   :  { %v91_v52 = vsub.f32 %v89_v51, %v90_v50 }
  0xb8   :  { %105 = vperm.xlu2 %122, %v91_v52  }
 0x10a   :  { %v95_v55 = vpop.permute.xlu2 %94 }
 0x10b   :  { %v99_v57 = vperm.slane %v95_v55, %v98_v56 }
 0x10d   :  { %v101_v59 = vmul.f32 %v99_v57, %v151_v0  ;;  %v102_v60 = vmul.f32 %v99_v57, %v156_v1 }
 0x112   :  { %v106_v58 = vpop.permute.xlu2 %105 }
 0x113   :  { %v110_v61 = vperm.slane %v106_v58, %v98_v56 }
 0x115   :  { %v112_v62 = vadd.f32 %v110_v61, %v101_v59  ;;  %v113_v63 = vadd.f32 %v110_v61, %v102_v60 }
 0x117   :  { %114 = vst [vmem:[%s193_s3] sm:$0xff] %v112_v62 }
 0x118   :  { %115 = vst [vmem:[%s193_s3 + $0x8] sm:$0xff] %v113_v63 }

</bundles_post_ra>
